<compile_context>
chip_gen: v6e
topology: v6e:2x2x1
jax: 0.10.0
libtpu: 0.0.40
codegen_flags: <defaults>
</compile_context>

<pallas_src>
import functools

import jax
import jax.numpy as jnp
from jax import lax
from jax.experimental import pallas as pl
from jax.experimental.pallas import tpu as pltpu


def _round_up(x, m):
    return (x + m - 1) // m * m


def _unet_down_kernel(xs_ref, w_ref, gamma_ref, beta_ref, mask_ref, out_ref,
                      *, tap_offsets, lp, inv_count, b_blk):
    # xs_ref   : (B_blk, 4C, Linp) bf16  space-to-depth input, spatial flattened (width Ws)
    # w_ref    : (O, 16C)          bf16  per-tap weights stacked along K
    # gamma_ref: (O, 1)            f32
    # beta_ref : (O, 1)            f32
    # mask_ref : (1, Lp)           f32   1.0 on valid output columns (0 on wrap/pad cols)
    # out_ref  : (B_blk, O, Lp)    bf16  lane-dense conv+IN+LeakyReLU output (dilated spatial)
    w = w_ref[...]
    gamma = gamma_ref[...]
    beta = beta_ref[...]
    mask = mask_ref[...]
    for b in range(b_blk):
        x = xs_ref[b]                                              # (4C, Linp) bf16
        # Stack the 4 shifted tap views once -> single implicit-GEMM contraction.
        rhs = jnp.concatenate([x[:, off:off + lp] for off in tap_offsets], axis=0)
        acc = jnp.dot(w, rhs, preferred_element_type=jnp.float32)  # (O, Lp) f32

        # InstanceNorm2d over valid columns (biased variance, eps=1e-5):
        # zero invalid columns once, fused E[x]/E[x^2] pass, single scale/shift.
        acc = acc * mask
        s1 = jnp.sum(acc, axis=1, keepdims=True)
        s2 = jnp.sum(acc * acc, axis=1, keepdims=True)
        mean = s1 * inv_count
        var = jnp.maximum(s2 * inv_count - mean * mean, 0.0)
        scale = gamma * lax.rsqrt(var + 1e-5)
        shift = beta - mean * scale
        y = acc * scale + shift

        # LeakyReLU(0.2)
        out_ref[b] = jnp.maximum(y, 0.2 * y).astype(out_ref.dtype)


def unet_down(x, weight, gamma, beta, *, out_dtype=jnp.bfloat16):
    """UNetDown forward (dropout=0).

    x: (N, C, H, W) f32; weight: (O, C, 4, 4); gamma/beta: (O,).
    Returns (N, O, H//2, W//2) in `out_dtype` (bf16 by default to halve writeback).
    """
    N, C, H, W = x.shape
    O = weight.shape[0]
    assert H % 2 == 0 and W % 2 == 0
    Ho, Wo = H // 2, W // 2
    Hs, Ws = Ho + 1, Wo + 1          # space-to-depth subgrid of the padded input
    C4, K16 = 4 * C, 16 * C
    Lout = Ho * Ws                   # dilated flat output width (one wrap column per row)
    Lp = _round_up(Lout, 128)        # lane-dense -> unmasked stores
    max_off = Ws + 1                 # largest tap shift
    Linp = _round_up(max(Hs * Ws, Lp + max_off), 128)

    # conv padding=1, then 2x2 space-to-depth; combined channel = rp*2C + cp*C + c.
    # TODO(synk): fold this space-to-depth (and the trailing slice) into the kernel via
    # strided DMAs from a pl.ANY-space NCHW ref to drop one full HBM round trip.
    xp = jnp.pad(x, ((0, 0), (0, 0), (1, 1), (1, 1)))
    xs = xp.reshape(N, C, Hs, 2, Ws, 2).transpose(0, 3, 5, 1, 2, 4)   # (N,2,2,C,Hs,Ws)
    xsf = xs.reshape(N, C4, Hs * Ws)
    xsf = jnp.pad(xsf, ((0, 0), (0, 0), (0, Linp - Hs * Ws)))         # (N, 4C, Linp)

    # Stacked-tap weight: w2[o, t*4C + rp*2C + cp*C + c] = weight[o, c, 2dh+rp, 2dw+cp],
    # with t = 2*dh + dw (matches the rhs concat order in the kernel).
    w2 = (weight.reshape(O, C, 2, 2, 2, 2)      # (o, c, dh, rp, dw, cp)
                .transpose(0, 2, 4, 3, 5, 1)    # (o, dh, dw, rp, cp, c)
                .reshape(O, K16))

    # Valid-column mask for the dilated + 128-padded spatial axis (tiny, host-side).
    cols = jnp.arange(Lp)
    mask = ((cols % Ws < Wo) & (cols < Lout)).astype(jnp.float32).reshape(1, Lp)

    tap_offsets = tuple(dh * Ws + dw for dh in range(2) for dw in range(2))

    # Several images per grid step when the per-image working set is small
    # (amortizes the fixed per-step overhead on small layers).
    per_img_bytes = C4 * Linp * 2 + K16 * Lp * 2 + O * Lp * 4 + O * Lp * 2
    b_blk = max(1, min(N, (4 << 20) // max(per_img_bytes, 1)))
    while N % b_blk:
        b_blk -= 1

    kernel = functools.partial(
        _unet_down_kernel, tap_offsets=tap_offsets, lp=Lp,
        inv_count=1.0 / float(Ho * Wo), b_blk=b_blk)

    out = pl.pallas_call(
        kernel,
        out_shape=jax.ShapeDtypeStruct((N, O, Lp), out_dtype),
        grid_spec=pltpu.PrefetchScalarGridSpec(
            num_scalar_prefetch=0,
            grid=(N // b_blk,),
            in_specs=[
                pl.BlockSpec((b_blk, C4, Linp), lambda n: (n, 0, 0)),   # input block
                pl.BlockSpec((O, K16), lambda n: (0, 0)),               # weights (resident)
                pl.BlockSpec((O, 1), lambda n: (0, 0)),                 # gamma
                pl.BlockSpec((O, 1), lambda n: (0, 0)),                 # beta
                pl.BlockSpec((1, Lp), lambda n: (0, 0)),                # valid mask
            ],
            out_specs=pl.BlockSpec((b_blk, O, Lp), lambda n: (n, 0, 0)),
        ),
        compiler_params=pltpu.CompilerParams(
            dimension_semantics=("parallel",),
            vmem_limit_bytes=48 * 1024 * 1024),
    )(xsf.astype(jnp.bfloat16), w2.astype(jnp.bfloat16),
      gamma.reshape(O, 1).astype(jnp.float32),
      beta.reshape(O, 1).astype(jnp.float32),
      mask)

    # (N, O, Lp) -> drop lane padding and the per-row wrap column (no transpose needed).
    # TODO(synk): large H*W / large O configs need a spatial (and O-block) grid axis with a
    # two-pass instance norm; this whole-image-per-step layout targets small/medium layers.
    return out[:, :, :Lout].reshape(N, O, Ho, Ws)[:, :, :, :Wo]


def _reference(x, weight, gamma, beta):
    y = lax.conv_general_dilated(
        x, weight, window_strides=(2, 2), padding=((1, 1), (1, 1)),
        dimension_numbers=("NCHW", "OIHW", "NCHW"))
    mean = jnp.mean(y, axis=(2, 3), keepdims=True)
    var = jnp.mean((y - mean) ** 2, axis=(2, 3), keepdims=True)
    y = (y - mean) * lax.rsqrt(var + 1e-5)
    y = y * gamma.reshape(1, -1, 1, 1) + beta.reshape(1, -1, 1, 1)
    return jnp.where(y >= 0, y, 0.2 * y)


if __name__ == "__main__":
    # UNetDown(in_size=4, out_size=8, normalize=True, dropout=0.0)
    in_size, out_size = 4, 8
    N, H, W = 2, 16, 16

    key = jax.random.PRNGKey(0)
    kx, kw, kg, kb = jax.random.split(key, 4)
    x = jax.random.normal(kx, (N, in_size, H, W), dtype=jnp.float32)
    weight = 0.1 * jax.random.normal(kw, (out_size, in_size, 4, 4), dtype=jnp.float32)
    gamma = jnp.ones((out_size,), jnp.float32) + 0.1 * jax.random.normal(kg, (out_size,))
    beta = 0.1 * jax.random.normal(kb, (out_size,), dtype=jnp.float32)

    out = unet_down(x, weight, gamma, beta)
    jax.block_until_ready(out)

    ref = _reference(x, weight, gamma, beta)
    assert out.shape == (N, out_size, H // 2, W // 2)
    # bf16 MXU operands + bf16 output writeback (f32 accumulate/norm) -> relaxed
    # tolerance vs the f32 reference.
    out_f32 = out.astype(jnp.float32)
    max_err = float(jnp.max(jnp.abs(out_f32 - ref)))
    assert jnp.allclose(out_f32, ref, atol=4e-2, rtol=4e-2), f"max abs err {max_err}"

    print("KERNEL_OK")
</pallas_src>

<mosaic_0001>
module attributes {stable_mosaic.version = 11 : i64} {
  func.func @_unet_down_kernel(%arg0: i32, %arg1: memref<2x16x256xbf16, #tpu.memory_space<vmem>>, %arg2: memref<8x64xbf16, #tpu.memory_space<vmem>>, %arg3: memref<8x1xf32, #tpu.memory_space<vmem>>, %arg4: memref<8x1xf32, #tpu.memory_space<vmem>>, %arg5: memref<1x128xf32, #tpu.memory_space<vmem>>, %arg6: memref<2x8x128xbf16, #tpu.memory_space<vmem>>) attributes {dimension_semantics = [#tpu.dimension_semantics<parallel>], iteration_bounds = array<i64: 1>, scalar_prefetch = 0 : i64, scratch_operands = 0 : i64, tpu.core_type = #tpu.core_type<tc>, window_params = [{transform_indices = @transform_0, window_bounds = array<i64: 2, 16, 256>}, {pipeline_mode = #tpu.pipeline_mode<synchronous>, transform_indices = @transform_1, window_bounds = array<i64: 8, 64>}, {pipeline_mode = #tpu.pipeline_mode<synchronous>, transform_indices = @transform_2, window_bounds = array<i64: 8, 1>}, {pipeline_mode = #tpu.pipeline_mode<synchronous>, transform_indices = @transform_3, window_bounds = array<i64: 8, 1>}, {pipeline_mode = #tpu.pipeline_mode<synchronous>, transform_indices = @transform_4, window_bounds = array<i64: 1, 128>}, {transform_indices = @transform_5, window_bounds = array<i64: 2, 8, 128>}]} {
    %c0 = arith.constant 0 : index
    %c0_0 = arith.constant 0 : index
    %0 = vector.load %arg2[%c0, %c0_0] : memref<8x64xbf16, #tpu.memory_space<vmem>>, vector<8x64xbf16>
    %c0_1 = arith.constant 0 : index
    %c0_2 = arith.constant 0 : index
    %1 = vector.load %arg3[%c0_1, %c0_2] : memref<8x1xf32, #tpu.memory_space<vmem>>, vector<8x1xf32>
    %c0_3 = arith.constant 0 : index
    %c0_4 = arith.constant 0 : index
    %2 = vector.load %arg4[%c0_3, %c0_4] : memref<8x1xf32, #tpu.memory_space<vmem>>, vector<8x1xf32>
    %c0_5 = arith.constant 0 : index
    %c0_6 = arith.constant 0 : index
    %3 = vector.load %arg5[%c0_5, %c0_6] : memref<1x128xf32, #tpu.memory_space<vmem>>, vector<1x128xf32>
    %c0_7 = arith.constant 0 : index
    %c0_8 = arith.constant 0 : index
    %c0_9 = arith.constant 0 : index
    %4 = vector.load %arg1[%c0_7, %c0_8, %c0_9] : memref<2x16x256xbf16, #tpu.memory_space<vmem>>, vector<1x16x256xbf16>
    %5 = vector.shape_cast %4 : vector<1x16x256xbf16> to vector<16x256xbf16>
    %6 = vector.extract_strided_slice %5 {offsets = [0, 0], sizes = [16, 128], strides = [1, 1]} : vector<16x256xbf16> to vector<16x128xbf16>
    %7 = vector.extract_strided_slice %5 {offsets = [0, 1], sizes = [16, 128], strides = [1, 1]} : vector<16x256xbf16> to vector<16x128xbf16>
    %8 = vector.extract_strided_slice %5 {offsets = [0, 9], sizes = [16, 128], strides = [1, 1]} : vector<16x256xbf16> to vector<16x128xbf16>
    %9 = vector.extract_strided_slice %5 {offsets = [0, 10], sizes = [16, 128], strides = [1, 1]} : vector<16x256xbf16> to vector<16x128xbf16>
    %10 = tpu.concatenate %6, %7, %8, %9 in 0 : vector<16x128xbf16>, vector<16x128xbf16>, vector<16x128xbf16>, vector<16x128xbf16> -> vector<64x128xbf16>
    %cst = arith.constant dense<0.000000e+00> : vector<8x128xf32>
    %11 = tpu.matmul %0, %10, %cst {dimension_numbers = #tpu.dot_dimension_numbers<[1], [0], [0], [1], [0, 0, 1, 1], [], []>} : vector<8x64xbf16>, vector<64x128xbf16>, vector<8x128xf32> -> vector<8x128xf32>
    %12 = vector.broadcast %3 : vector<1x128xf32> to vector<8x128xf32>
    %13 = arith.mulf %11, %12 : vector<8x128xf32>
    %cst_10 = arith.constant dense<0.000000e+00> : vector<8xf32>
    %14 = vector.multi_reduction <add>, %13, %cst_10 [1] : vector<8x128xf32> to vector<8xf32>
    %15 = vector.shape_cast %14 : vector<8xf32> to vector<8x1xf32>
    %16 = arith.mulf %13, %13 : vector<8x128xf32>
    %cst_11 = arith.constant dense<0.000000e+00> : vector<8xf32>
    %17 = vector.multi_reduction <add>, %16, %cst_11 [1] : vector<8x128xf32> to vector<8xf32>
    %18 = vector.shape_cast %17 : vector<8xf32> to vector<8x1xf32>
    %cst_12 = arith.constant 1.562500e-02 : f32
    %19 = vector.broadcast %cst_12 : f32 to vector<8x1xf32>
    %20 = arith.mulf %15, %19 : vector<8x1xf32>
    %cst_13 = arith.constant 1.562500e-02 : f32
    %21 = vector.broadcast %cst_13 : f32 to vector<8x1xf32>
    %22 = arith.mulf %18, %21 : vector<8x1xf32>
    %23 = arith.mulf %20, %20 : vector<8x1xf32>
    %24 = arith.subf %22, %23 : vector<8x1xf32>
    %cst_14 = arith.constant 0.000000e+00 : f32
    %25 = vector.broadcast %cst_14 : f32 to vector<8x1xf32>
    %26 = arith.maximumf %24, %25 : vector<8x1xf32>
    %cst_15 = arith.constant 9.99999974E-6 : f32
    %27 = vector.broadcast %cst_15 : f32 to vector<8x1xf32>
    %28 = arith.addf %26, %27 : vector<8x1xf32>
    %29 = math.rsqrt %28 : vector<8x1xf32>
    %30 = arith.mulf %1, %29 : vector<8x1xf32>
    %31 = arith.mulf %20, %30 : vector<8x1xf32>
    %32 = arith.subf %2, %31 : vector<8x1xf32>
    %33 = vector.broadcast %30 : vector<8x1xf32> to vector<8x128xf32>
    %34 = arith.mulf %13, %33 : vector<8x128xf32>
    %35 = vector.broadcast %32 : vector<8x1xf32> to vector<8x128xf32>
    %36 = arith.addf %34, %35 : vector<8x128xf32>
    %cst_16 = arith.constant 2.000000e-01 : f32
    %37 = vector.broadcast %cst_16 : f32 to vector<8x128xf32>
    %38 = arith.mulf %37, %36 : vector<8x128xf32>
    %39 = arith.maximumf %36, %38 : vector<8x128xf32>
    %40 = arith.truncf %39 : vector<8x128xf32> to vector<8x128xbf16>
    %c0_17 = arith.constant 0 : index
    %c0_18 = arith.constant 0 : index
    %c0_19 = arith.constant 0 : index
    %41 = vector.load %arg6[%c0_17, %c0_18, %c0_19] : memref<2x8x128xbf16, #tpu.memory_space<vmem>>, vector<1x8x128xbf16>
    %42 = vector.shape_cast %41 : vector<1x8x128xbf16> to vector<8x128xbf16>
    %43 = vector.shape_cast %40 : vector<8x128xbf16> to vector<1x8x128xbf16>
    tpu.vector_store %arg6[%c0_17, %c0_18, %c0_19], %43 {strides = array<i32>} : memref<2x8x128xbf16, #tpu.memory_space<vmem>>, vector<1x8x128xbf16>,
    %c1 = arith.constant 1 : index
    %c0_20 = arith.constant 0 : index
    %c0_21 = arith.constant 0 : index
    %44 = vector.load %arg1[%c1, %c0_20, %c0_21] : memref<2x16x256xbf16, #tpu.memory_space<vmem>>, vector<1x16x256xbf16>
    %45 = vector.shape_cast %44 : vector<1x16x256xbf16> to vector<16x256xbf16>
    %46 = vector.extract_strided_slice %45 {offsets = [0, 0], sizes = [16, 128], strides = [1, 1]} : vector<16x256xbf16> to vector<16x128xbf16>
    %47 = vector.extract_strided_slice %45 {offsets = [0, 1], sizes = [16, 128], strides = [1, 1]} : vector<16x256xbf16> to vector<16x128xbf16>
    %48 = vector.extract_strided_slice %45 {offsets = [0, 9], sizes = [16, 128], strides = [1, 1]} : vector<16x256xbf16> to vector<16x128xbf16>
    %49 = vector.extract_strided_slice %45 {offsets = [0, 10], sizes = [16, 128], strides = [1, 1]} : vector<16x256xbf16> to vector<16x128xbf16>
    %50 = tpu.concatenate %46, %47, %48, %49 in 0 : vector<16x128xbf16>, vector<16x128xbf16>, vector<16x128xbf16>, vector<16x128xbf16> -> vector<64x128xbf16>
    %cst_22 = arith.constant dense<0.000000e+00> : vector<8x128xf32>
    %51 = tpu.matmul %0, %50, %cst_22 {dimension_numbers = #tpu.dot_dimension_numbers<[1], [0], [0], [1], [0, 0, 1, 1], [], []>} : vector<8x64xbf16>, vector<64x128xbf16>, vector<8x128xf32> -> vector<8x128xf32>
    %52 = vector.broadcast %3 : vector<1x128xf32> to vector<8x128xf32>
    %53 = arith.mulf %51, %52 : vector<8x128xf32>
    %cst_23 = arith.constant dense<0.000000e+00> : vector<8xf32>
    %54 = vector.multi_reduction <add>, %53, %cst_23 [1] : vector<8x128xf32> to vector<8xf32>
    %55 = vector.shape_cast %54 : vector<8xf32> to vector<8x1xf32>
    %56 = arith.mulf %53, %53 : vector<8x128xf32>
    %cst_24 = arith.constant dense<0.000000e+00> : vector<8xf32>
    %57 = vector.multi_reduction <add>, %56, %cst_24 [1] : vector<8x128xf32> to vector<8xf32>
    %58 = vector.shape_cast %57 : vector<8xf32> to vector<8x1xf32>
    %cst_25 = arith.constant 1.562500e-02 : f32
    %59 = vector.broadcast %cst_25 : f32 to vector<8x1xf32>
    %60 = arith.mulf %55, %59 : vector<8x1xf32>
    %cst_26 = arith.constant 1.562500e-02 : f32
    %61 = vector.broadcast %cst_26 : f32 to vector<8x1xf32>
    %62 = arith.mulf %58, %61 : vector<8x1xf32>
    %63 = arith.mulf %60, %60 : vector<8x1xf32>
    %64 = arith.subf %62, %63 : vector<8x1xf32>
    %cst_27 = arith.constant 0.000000e+00 : f32
    %65 = vector.broadcast %cst_27 : f32 to vector<8x1xf32>
    %66 = arith.maximumf %64, %65 : vector<8x1xf32>
    %cst_28 = arith.constant 9.99999974E-6 : f32
    %67 = vector.broadcast %cst_28 : f32 to vector<8x1xf32>
    %68 = arith.addf %66, %67 : vector<8x1xf32>
    %69 = math.rsqrt %68 : vector<8x1xf32>
    %70 = arith.mulf %1, %69 : vector<8x1xf32>
    %71 = arith.mulf %60, %70 : vector<8x1xf32>
    %72 = arith.subf %2, %71 : vector<8x1xf32>
    %73 = vector.broadcast %70 : vector<8x1xf32> to vector<8x128xf32>
    %74 = arith.mulf %53, %73 : vector<8x128xf32>
    %75 = vector.broadcast %72 : vector<8x1xf32> to vector<8x128xf32>
    %76 = arith.addf %74, %75 : vector<8x128xf32>
    %cst_29 = arith.constant 2.000000e-01 : f32
    %77 = vector.broadcast %cst_29 : f32 to vector<8x128xf32>
    %78 = arith.mulf %77, %76 : vector<8x128xf32>
    %79 = arith.maximumf %76, %78 : vector<8x128xf32>
    %80 = arith.truncf %79 : vector<8x128xf32> to vector<8x128xbf16>
    %c1_30 = arith.constant 1 : index
    %c0_31 = arith.constant 0 : index
    %c0_32 = arith.constant 0 : index
    %81 = vector.load %arg6[%c1_30, %c0_31, %c0_32] : memref<2x8x128xbf16, #tpu.memory_space<vmem>>, vector<1x8x128xbf16>
    %82 = vector.shape_cast %81 : vector<1x8x128xbf16> to vector<8x128xbf16>
    %83 = vector.shape_cast %80 : vector<8x128xbf16> to vector<1x8x128xbf16>
    tpu.vector_store %arg6[%c1_30, %c0_31, %c0_32], %83 {strides = array<i32>} : memref<2x8x128xbf16, #tpu.memory_space<vmem>>, vector<1x8x128xbf16>,
    return
  }
  func.func @transform_0(%arg0: i32) -> (i32, i32, i32) {
    %c0_i32 = arith.constant 0 : i32
    %c0_i32_0 = arith.constant 0 : i32
    %c0_i32_1 = arith.constant 0 : i32
    return %arg0, %c0_i32, %c0_i32_0 : i32, i32, i32
  }
  func.func @transform_1(%arg0: i32) -> (i32, i32) {
    %c0_i32 = arith.constant 0 : i32
    %c0_i32_0 = arith.constant 0 : i32
    %c0_i32_1 = arith.constant 0 : i32
    return %c0_i32, %c0_i32_0 : i32, i32
  }
  func.func @transform_2(%arg0: i32) -> (i32, i32) {
    %c0_i32 = arith.constant 0 : i32
    %c0_i32_0 = arith.constant 0 : i32
    %c0_i32_1 = arith.constant 0 : i32
    return %c0_i32, %c0_i32_0 : i32, i32
  }
  func.func @transform_3(%arg0: i32) -> (i32, i32) {
    %c0_i32 = arith.constant 0 : i32
    %c0_i32_0 = arith.constant 0 : i32
    %c0_i32_1 = arith.constant 0 : i32
    return %c0_i32, %c0_i32_0 : i32, i32
  }
  func.func @transform_4(%arg0: i32) -> (i32, i32) {
    %c0_i32 = arith.constant 0 : i32
    %c0_i32_0 = arith.constant 0 : i32
    %c0_i32_1 = arith.constant 0 : i32
    return %c0_i32, %c0_i32_0 : i32, i32
  }
  func.func @transform_5(%arg0: i32) -> (i32, i32, i32) {
    %c0_i32 = arith.constant 0 : i32
    %c0_i32_0 = arith.constant 0 : i32
    %c0_i32_1 = arith.constant 0 : i32
    return %arg0, %c0_i32, %c0_i32_0 : i32, i32, i32
  }
}

</mosaic_0001>

<bundles_post_ra>
// kernel: tpu_custom_call.1
= control target key start
LH: loop header
LB: loop body
LE: loop exit
PB: predicated region body
PF: predicated region fallthrough
CT: control target
= control target key end

     0   :  { %10 = vsyncpa [#allocation3], 0  ;;  %s443_s0 = inlined_call_operand.hbm [shape: bf16[2,16,256], index: 0, kind: input, shape index: {}]   ;;  %s444_s1 = inlined_call_operand.vmem [shape: bf16[8,64], index: 1, kind: input, shape index: {}]   ;;  %s445_s2 = inlined_call_operand.vmem [shape: f32[8,1], index: 2, kind: input, shape index: {}]   ;;  %s446_s3 = inlined_call_operand.vmem [shape: f32[8,1], index: 3, kind: input, shape index: {}]   ;;  %s447_s4 = inlined_call_operand.vmem [shape: f32[1,128], index: 4, kind: input, shape index: {}]   ;;  %s448_s5 = inlined_call_operand.hbm [shape: bf16[2,8,128], index: 5, kind: output, shape index: {}]  }
   0x1   :  { %11 = vsyncpa [#allocation4], 0  ;;  %s383_s18 = smov [#allocation2]  }
   0x2   :  { %s17_s19 = sshll.u32 %s383_s18, 4  ;;  %s18_s19 = int_to_ptr.vmem [resolvable:$true] %s17_s19 }
   0x3   :  { %s347_s20 = scalar_lea.vmem %s18_s19, 512  ;;  %p352_p1 = scmp.lt.s32.totalorder %s18_s19, %s18_s19 }
   0x4   :  { %p348_p0 = scmp.ne.s32.totalorder %s18_s19, %s347_s20  ;;  %p353_p2 = scmp.lt.s32.totalorder %s347_s20, %s347_s20 }
   0x6   :  { %p354_p3 = por %p353_p2, %p352_p1 }
   0x8   :  { %p355_p4 = pnand %p354_p3, %p348_p0 }
   0xa   :  { %358 = shalt.err (!%p355_p4)
}
   0xb   :  { %s384_s21 = smov 128   ;;  %s385_s22 = smov 8  }
   0xc   :  { %23 = dma.hbm_to_vmem [thread:$0]  %s443_s0, 512, %s18_s19, [#allocation3], %s384_s21, %s384_s21, %s385_s22  }
   0xd   :  { %379 = dma.done.wait [#allocation3], 512  }
   0xe   :  { %380 = vsyncadd [#allocation3], 4294966784  ;;  %v386_v0 = vmov 0.0   ;;  %v329_v1 = vld [vmem:[#allocation2 + $0x10] ss:$8 sps:$4 sm:$0xff]   ;;  %s387_s25 = smov 118  }
   0xf   :  { %291 = vmatprep.subr.bf16.mxu0 %v386_v0  ;;  %303 = vmatprep.subr.bf16.mxu1 %v386_v0  ;;  %v331_v2 = vld [vmem:[#allocation2] ss:$8 sps:$4 sm:$0xff]   ;;  %v333_v3 = vld [vmem:[#allocation2 + $0x14] ss:$8 sps:$4 sm:$0xff]   ;;  %v334_v4 = vld [vmem:[#allocation2 + $0x4] ss:$8 sps:$4 sm:$0xff]  }
  0x10   :  { %178 = vrot.lane.b32.xlu1 %v329_v1, %s387_s25  ;;  %65 = vrot.lane.b32.xlu0 %v331_v2, %s387_s25  ;;  %s388_s26 = smov 119   ;;  %vm389_vm0 = vmmov 0   ;;  %s390_s0 = smov 127   ;;  %vm69_vm1 = vcmask 965632   ;;  %vm62_vm2 = vcmask 973824   ;;  %vm55_vm3 = vcmask 1039360  }
  0x11   :  { %299 = vmatprep.mubr.msk.bf16.mxu0 %vm389_vm0, %v386_v0  ;;  %311 = vmatprep.mubr.msk.bf16.mxu1 %vm389_vm0, %v386_v0  ;;  %v36_v23 = vld [vmem:[%s444_s1] sm:$0xf]  ;;  %vm72_vm4 = vcmask 523264   ;;  %v391_v37 = vmov 0  }
  0x12   :  { %v277_v24 = vld [vmem:[%s447_s4] ss:$0 sm:$0xff]  ;;  %327 = vset.pattern.permute.xlu1 %v391_v37  ;;  %328 = vset.pattern.permute.xlu0 %v391_v37 }
  0x13   :  { %v37_v54 = vld [vmem:[%s445_s2] sm:$0xff]  ;;  %s392_s2 = smov [#allocation5]  }
  0x14   :  { %180 = vrot.lane.b32.xlu1 %v333_v3, %s387_s25  ;;  %67 = vrot.lane.b32.xlu0 %v334_v4, %s387_s25  ;;  %v38_v57 = vld [vmem:[%s446_s3] sm:$0xff]  ;;  %s262_s3 = sshll.u32 %s392_s2, 4  ;;  %s263_s3 = int_to_ptr.vmem [resolvable:$true] %s262_s3 }
  0x15   :  { %s359_s8 = scalar_lea.vmem %s263_s3, 128  ;;  %p364_p6 = scmp.lt.s32.totalorder %s263_s3, %s263_s3 }
  0x16   :  { %p360_p5 = scmp.ne.s32.totalorder %s263_s3, %s359_s8  ;;  %p365_p7 = scmp.lt.s32.totalorder %s359_s8, %s359_s8 }
  0x18   :  { %60 = vrot.lane.b32.xlu1 %v334_v4, %s388_s26  ;;  %58 = vrot.lane.b32.xlu0 %v331_v2, %s388_s26  ;;  %p366_p8 = por %p365_p7, %p364_p6 }
  0x1a   :  { %p367_p9 = pnand %p366_p8, %p360_p5 }
  0x1c   :  { %174 = vrot.lane.b32.xlu1 %v333_v3, %s388_s26  ;;  %172 = vrot.lane.b32.xlu0 %v329_v1, %s388_s26 }
  0x20   :  { %53 = vrot.lane.b32.xlu1 %v334_v4, %s390_s0  ;;  %51 = vrot.lane.b32.xlu0 %v331_v2, %s390_s0 }
  0x24   :  { %168 = vrot.lane.b32.xlu1 %v333_v3, %s390_s0  ;;  %166 = vrot.lane.b32.xlu0 %v329_v1, %s390_s0 }
  0x82   :  { %v179_v5 = vpop.permute.xlu1 %178  ;;  %v66_v6 = vpop.permute.xlu0 %65 }
  0x86   :  { %v181_v7 = vpop.permute.xlu1 %180  ;;  %v68_v8 = vpop.permute.xlu0 %67 }
  0x87   :  { %v182_v9 = vsel %vm69_vm1, %v179_v5, %v181_v7  ;;  %v70_v10 = vsel %vm69_vm1, %v66_v6, %v68_v8 }
  0x88   :  { %304 = vmatpush3.bf16.msra.mxu1 %v182_v9  ;;  %292 = vmatpush3.bf16.msra.mxu0 %v70_v10 }
  0x89   :  { %305 = vmatprep.subr.bf16.mxu1 %v386_v0  ;;  %293 = vmatprep.subr.bf16.mxu0 %v386_v0 }
  0x8a   :  { %v61_v11 = vpop.permute.xlu1 %60  ;;  %v59_v12 = vpop.permute.xlu0 %58 }
  0x8b   :  { %v63_v13 = vsel %vm62_vm2, %v59_v12, %v61_v11 }
  0x8c   :  { %294 = vmatpush3.bf16.msra.mxu0 %v63_v13 }
  0x8d   :  { %295 = vmatprep.subr.bf16.mxu0 %v386_v0 }
  0x8e   :  { %v175_v14 = vpop.permute.xlu1 %174  ;;  %v173_v15 = vpop.permute.xlu0 %172 }
  0x8f   :  { %v176_v16 = vsel %vm62_vm2, %v173_v15, %v175_v14 }
  0x90   :  { %306 = vmatpush3.bf16.msra.mxu1 %v176_v16 }
  0x91   :  { %307 = vmatprep.subr.bf16.mxu1 %v386_v0 }
  0x92   :  { %v54_v17 = vpop.permute.xlu1 %53  ;;  %v52_v18 = vpop.permute.xlu0 %51 }
  0x93   :  { %v56_v19 = vsel %vm55_vm3, %v52_v18, %v54_v17 }
  0x94   :  { %296 = vmatpush3.bf16.msra.mxu0 %v56_v19 }
  0x95   :  { %297 = vmatprep.subr.bf16.mxu0 %v386_v0 }
  0x96   :  { %v169_v20 = vpop.permute.xlu1 %168  ;;  %v167_v21 = vpop.permute.xlu0 %166 }
  0x97   :  { %v170_v22 = vsel %vm55_vm3, %v167_v21, %v169_v20 }
  0x98   :  { %298 = vmatpush3.bf16.msra.mxu0 %v331_v2  ;;  %308 = vmatpush3.bf16.msra.mxu1 %v170_v22 }
  0x99   :  { %309 = vmatprep.subr.bf16.mxu1 %v386_v0 }
  0x9b   :  { %300 = vmatmul.mubr.msk.bf16.vlgmr.msra.gmra.mxu0 %vm72_vm4, %v36_v23 }
  0x9c   :  { %310 = vmatpush3.bf16.msra.mxu1 %v329_v1 }
  0x9f   :  { %312 = vmatmul.mubr.msk.bf16.vlgmr.msra.gmra.mxu1 %vm72_vm4, %v36_v23 }
 0x15b   :  { %v110_v25 = vpop.f32.mrf.mxu0 }
 0x15c   :  { %v122_v26 = vmul.f32 %v277_v24, %v110_v25 }
 0x15d   :  { %v301_v27 = vpop.f32.mrf.mxu0 }
 0x15e   :  { %123 = vadd.xlane.f32.xlu0 %v122_v26  ;;  %v125_v31 = vmul.f32 %v122_v26, %v122_v26 }
 0x15f   :  { %v113_v28 = vpop.f32.mrf.mxu0  ;;  %v218_v29 = vpop.f32.mrf.mxu1 }
 0x160   :  { %v224_v30 = vmul.f32 %v277_v24, %v218_v29 }
 0x161   :  { %v302_v32 = vpop.f32.mrf.mxu0  ;;  %v313_v33 = vpop.f32.mrf.mxu1 }
 0x162   :  { %126 = vadd.xlane.f32.xlu0 %v125_v31  ;;  %225 = vadd.xlane.f32.xlu1 %v224_v30  ;;  %v227_v34 = vmul.f32 %v224_v30, %v224_v30 }
 0x163   :  { %v221_v35 = vpop.f32.mrf.mxu1 }
 0x165   :  { %v314_v36 = vpop.f32.mrf.mxu1 }
 0x166   :  { %228 = vadd.xlane.f32.xlu0 %v227_v34 }
 0x1e7   :  { %v124_v38 = vpop.xlane.xlu0 %123 }
 0x1e8   :  { %v128_v39 = vmul.f32 0.015625, %v124_v38 }
 0x1ea   :  { %v130_v42 = vmul.f32 %v128_v39, %v128_v39 }
 0x1eb   :  { %v127_v40 = vpop.xlane.xlu0 %126  ;;  %v226_v41 = vpop.xlane.xlu1 %225 }
 0x1ec   :  { %v129_v43 = vmul.f32 0.015625, %v127_v40  ;;  %v230_v44 = vmul.f32 0.015625, %v226_v41 }
 0x1ee   :  { %v131_v45 = vsub.f32 %v129_v43, %v130_v42  ;;  %v232_v46 = vmul.f32 %v230_v44, %v230_v44 }
 0x1ef   :  { %v229_v47 = vpop.xlane.xlu0 %228 }
 0x1f0   :  { %v132_v48 = vmax.f32 %v131_v45, 0.0  ;;  %v231_v49 = vmul.f32 0.015625, %v229_v47 }
 0x1f2   :  { %v133_v50 = vadd.f32 1e-05, %v132_v48  ;;  %v233_v51 = vsub.f32 %v231_v49, %v232_v46 }
 0x1f4   :  { %335 = vrsqrt.f32 %v133_v50  ;;  %v234_v52 = vmax.f32 %v233_v51, 0.0 }
 0x1f6   :  { %v235_v53 = vadd.f32 1e-05, %v234_v52 }
 0x1f8   :  { %337 = vrsqrt.f32 %v235_v53 }
 0x201   :  { %v336_v55 = vpop.eup %335 }
 0x202   :  { %v135_v56 = vmul.f32 %v336_v55, %v37_v54 }
 0x204   :  { %140 = vperm.xlu1 %327, %v135_v56   ;;  %v136_v58 = vmul.f32 %v135_v56, %v128_v39 }
 0x205   :  { %v338_v59 = vpop.eup %337 }
 0x206   :  { %v137_v60 = vsub.f32 %v38_v57, %v136_v58  ;;  %v237_v61 = vmul.f32 %v338_v59, %v37_v54 }
 0x208   :  { %146 = vperm.xlu1 %327, %v137_v60   ;;  %242 = vperm.xlu0 %328, %v237_v61   ;;  %v238_v62 = vmul.f32 %v237_v61, %v230_v44 }
 0x20a   :  { %v239_v63 = vsub.f32 %v38_v57, %v238_v62 }
 0x20c   :  { %248 = vperm.xlu1 %327, %v239_v63  }
 0x27f   :  { %v141_v0 = vpop.permute.xlu1 %140 }
 0x280   :  { %v143_v1 = vmul.f32 %v141_v0, %v122_v26 }
 0x283   :  { %v147_v2 = vpop.permute.xlu1 %146  ;;  %v243_v3 = vpop.permute.xlu0 %242 }
 0x284   :  { %v149_v4 = vadd.f32 %v147_v2, %v143_v1  ;;  %v245_v6 = vmul.f32 %v243_v3, %v224_v30 }
 0x286   :  { %v150_v5 = vmul.f32 0.2, %v149_v4 }
 0x287   :  { %v249_v7 = vpop.permute.xlu1 %248 }
 0x288   :  { %v151_v8 = vmax.f32 %v149_v4, %v150_v5  ;;  %v251_v9 = vadd.f32 %v249_v7, %v245_v6 }
 0x28a   :  { %v152_v10 = vpack.c.bf16 %v151_v8, %v151_v8  ;;  %v252_v11 = vmul.f32 0.2, %v251_v9 }
 0x28c   :  { %153 = vst [vmem:[#allocation5] sm:$0xf] %v152_v10  ;;  %v253_v12 = vmax.f32 %v251_v9, %v252_v11 }
 0x28e   :  { %v254_v13 = vpack.c.bf16 %v253_v12, %v253_v12 }
 0x290   :  { %256 = vst [vmem:[#allocation5 + $0x4] sm:$0xf] %v254_v13 }
 0x291   :  { %370 = shalt.err (!%p367_p9)
}
 0x292   :  { %s393_s9 = smov 64   ;;  %s394_s10 = smov 4  }
 0x293   :  { %268 = dma.vmem_to_hbm [thread:$0]  %s263_s3, 128, %s448_s5, [#allocation4], %s393_s9, %s393_s9, %s394_s10  }
 0x294   :  { %381 = dma.done.wait [#allocation4], 128  }
 0x295   :  { %382 = vsyncadd [#allocation4], 4294967168 }
 0x296   :  { %272 = vsyncpa [#allocation3], 1 }
 0x297   :  { %273 = vsyncpa [#allocation4], 1 }

</bundles_post_ra>
